<compile_context>
chip_gen: v6e
topology: v6e:2x2x1
jax: 0.10.0
libtpu: 0.0.40
codegen_flags: <defaults>
</compile_context>

<pallas_src>
import jax
import jax.numpy as jnp
from jax.experimental import pallas as pl
from jax.experimental.pallas import tpu as pltpu


def _round_up(x: int, m: int) -> int:
    return ((x + m - 1) // m) * m


def _nlinear_kernel(x_ref, w_ref, b_ref, o_ref):
    # x_ref: (bn, B, d_in), w_ref: (bn, d_in, d_out), b_ref: (bn, 1, d_out), o_ref: (bn, B, d_out)
    acc = jnp.einsum(
        "nbk,nko->nbo", x_ref[...], w_ref[...], preferred_element_type=jnp.float32
    )
    o_ref[...] = (acc + b_ref[...].astype(jnp.float32)).astype(o_ref.dtype)


def _plan_tiles(B, n, d_in, d_out, itemsize):
    """Pick the n-block size bn and a VMEM limit.

    Targets a ~4 MiB weight tile (the dominant stream), keeps >= 4 grid steps so
    v7x megacore has work for both TensorCores, keeps bn a multiple of 8, and
    shrinks bn if the double-buffered operand estimate would blow the VMEM budget.
    """
    target_w_tile = 4 << 20          # ~4 MiB weight slab per grid step
    budget = 40 << 20                # double-buffered operands must stay under this

    per_row_w = max(1, d_in * d_out * itemsize)
    bn = max(1, target_w_tile // per_row_w)
    bn = min(bn, max(1, pl.cdiv(n, 4)))       # keep >= ~4 grid steps (v7x megacore)
    bn = max(8, (bn // 8) * 8)                # sublane-friendly multiple of 8
    bn = min(bn, _round_up(n, 8))             # never larger than (padded) n

    def vmem_need(bn_):
        w = bn_ * d_in * d_out * itemsize
        xx = bn_ * B * d_in * itemsize
        oo = bn_ * B * d_out * itemsize
        bb = bn_ * d_out * itemsize
        return 2 * (w + xx + oo + bb)         # BlockSpec double-buffers every operand

    while bn > 8 and vmem_need(bn) > budget:
        bn = max(8, ((bn // 2) // 8) * 8)

    vmem_limit = int(min(max(vmem_need(bn) + (4 << 20), 16 << 20), 48 << 20))
    return bn, vmem_limit


def nlinear(x, weight, bias=None):
    """x: (B, n, d_in); weight: (n, d_in, d_out); bias: (n, d_out) or None -> (B, n, d_out)."""
    assert x.ndim == 3, f"Error input dimension, should be 3, but given {x.ndim}"
    B, n, d_in = x.shape
    n_w, d_in_w, d_out = weight.shape
    assert n == n_w and d_in == d_in_w

    if bias is None:
        # Module supports bias=False; a zero bias keeps a single kernel path (cost is
        # negligible next to the weight stream).
        bias = jnp.zeros((n, d_out), weight.dtype)

    itemsize = jnp.dtype(weight.dtype).itemsize
    bn, vmem_limit = _plan_tiles(B, n, d_in, d_out, itemsize)
    n_pad = _round_up(n, bn)

    # Present leading-batch-dim layouts to the kernel (MXU-native batched contraction).
    x_t = jnp.transpose(x, (1, 0, 2))          # (n, B, d_in)
    b3 = bias.reshape(n, 1, d_out)             # (n, 1, d_out)
    w3 = weight                                # (n, d_in, d_out)

    if n_pad != n:
        pad = n_pad - n
        x_t = jnp.pad(x_t, ((0, pad), (0, 0), (0, 0)))
        w3 = jnp.pad(w3, ((0, pad), (0, 0), (0, 0)))
        b3 = jnp.pad(b3, ((0, pad), (0, 0), (0, 0)))

    grid = (n_pad // bn,)

    out_t = pl.pallas_call(
        _nlinear_kernel,
        out_shape=jax.ShapeDtypeStruct((n_pad, B, d_out), x.dtype),
        grid=grid,
        in_specs=[
            pl.BlockSpec((bn, B, d_in), lambda i: (i, 0, 0)),
            pl.BlockSpec((bn, d_in, d_out), lambda i: (i, 0, 0)),
            pl.BlockSpec((bn, 1, d_out), lambda i: (i, 0, 0)),
        ],
        out_specs=pl.BlockSpec((bn, B, d_out), lambda i: (i, 0, 0)),
        compiler_params=pltpu.CompilerParams(
            dimension_semantics=("parallel",),
            vmem_limit_bytes=vmem_limit,
        ),
    )(x_t, w3, b3)

    return jnp.transpose(out_t[:n], (1, 0, 2))  # (B, n, d_out)


def init_nlinear_params(key, n, d_in, d_out, dtype=jnp.float32):
    # Deterministic synthetic init mimicking nn.Linear's U(-1/sqrt(d_in), 1/sqrt(d_in)).
    kw, kb = jax.random.split(key)
    bound = 1.0 / jnp.sqrt(jnp.array(d_in, dtype))
    weight = jax.random.uniform(kw, (n, d_in, d_out), dtype, -bound, bound)
    bias = jax.random.uniform(kb, (n, d_out), dtype, -bound, bound)
    return weight, bias


def _reference(x, weight, bias):
    # Pure-JAX reference (identical semantics to the PyTorch forward).
    out = (x[..., None] * weight[None]).sum(-2)
    if bias is not None:
        out = out + bias[None]
    return out


if __name__ == "__main__":
    key = jax.random.PRNGKey(0)

    # Test 1: small, block-aligned shapes.
    B, n, d_in, d_out = 2, 8, 32, 32
    kx, kp, key = jax.random.split(key, 3)
    x = jax.random.normal(kx, (B, n, d_in), jnp.float32)
    weight, bias = init_nlinear_params(kp, n, d_in, d_out)

    out = jax.block_until_ready(nlinear(x, weight, bias))
    ref = _reference(x, weight, bias)
    assert out.shape == (B, n, d_out)
    assert jnp.allclose(out, ref, atol=1e-5, rtol=1e-5)

    # Test 2: ragged n (exercises the zero-padding path) and non-square dims.
    B2, n2, d_in2, d_out2 = 3, 13, 40, 24
    kx2, kp2 = jax.random.split(key)
    x2 = jax.random.normal(kx2, (B2, n2, d_in2), jnp.float32)
    weight2, bias2 = init_nlinear_params(kp2, n2, d_in2, d_out2)

    out2 = jax.block_until_ready(nlinear(x2, weight2, bias2))
    ref2 = _reference(x2, weight2, bias2)
    assert out2.shape == (B2, n2, d_out2)
    assert jnp.allclose(out2, ref2, atol=3e-5, rtol=3e-5)

    print("KERNEL_OK")
</pallas_src>

<mosaic_0001>
module attributes {stable_mosaic.version = 11 : i64} {
  func.func @_nlinear_kernel(%arg0: i32, %arg1: memref<8x2x32xf32, #tpu.memory_space<vmem>>, %arg2: memref<8x32x32xf32, #tpu.memory_space<vmem>>, %arg3: memref<8x1x32xf32, #tpu.memory_space<vmem>>, %arg4: memref<8x2x32xf32, #tpu.memory_space<vmem>>) attributes {dimension_semantics = [#tpu.dimension_semantics<parallel>], iteration_bounds = array<i64: 1>, scalar_prefetch = 0 : i64, scratch_operands = 0 : i64, tpu.core_type = #tpu.core_type<tc>, window_params = [{transform_indices = @transform_0, window_bounds = array<i64: 8, 2, 32>}, {transform_indices = @transform_1, window_bounds = array<i64: 8, 32, 32>}, {transform_indices = @transform_2, window_bounds = array<i64: 8, 1, 32>}, {transform_indices = @transform_3, window_bounds = array<i64: 8, 2, 32>}]} {
    %c0 = arith.constant 0 : index
    %c0_0 = arith.constant 0 : index
    %c0_1 = arith.constant 0 : index
    %0 = vector.load %arg1[%c0, %c0_0, %c0_1] : memref<8x2x32xf32, #tpu.memory_space<vmem>>, vector<8x2x32xf32>
    %c0_2 = arith.constant 0 : index
    %c0_3 = arith.constant 0 : index
    %c0_4 = arith.constant 0 : index
    %1 = vector.load %arg2[%c0_2, %c0_3, %c0_4] : memref<8x32x32xf32, #tpu.memory_space<vmem>>, vector<8x32x32xf32>
    "tpu.trace_start"() <{level = 10 : i32, message = "nbk,nko->nbo"}> : () -> ()
    %cst = arith.constant dense<0.000000e+00> : vector<8x2x32xf32>
    %2 = tpu.matmul %0, %1, %cst {dimension_numbers = #tpu.dot_dimension_numbers<[2], [1], [1], [2], [0, 0, 0, 1, 1, 2], [0], [0]>} : vector<8x2x32xf32>, vector<8x32x32xf32>, vector<8x2x32xf32> -> vector<8x2x32xf32>
    "tpu.trace_stop"() : () -> ()
    %c0_5 = arith.constant 0 : index
    %c0_6 = arith.constant 0 : index
    %c0_7 = arith.constant 0 : index
    %3 = vector.load %arg3[%c0_5, %c0_6, %c0_7] : memref<8x1x32xf32, #tpu.memory_space<vmem>>, vector<8x1x32xf32>
    %4 = vector.broadcast %3 : vector<8x1x32xf32> to vector<8x2x32xf32>
    %5 = arith.addf %2, %4 : vector<8x2x32xf32>
    %c0_8 = arith.constant 0 : index
    %c0_9 = arith.constant 0 : index
    %c0_10 = arith.constant 0 : index
    %6 = vector.load %arg4[%c0_8, %c0_9, %c0_10] : memref<8x2x32xf32, #tpu.memory_space<vmem>>, vector<8x2x32xf32>
    tpu.vector_store %arg4[%c0_8, %c0_9, %c0_10], %5 {strides = array<i32>} : memref<8x2x32xf32, #tpu.memory_space<vmem>>, vector<8x2x32xf32>,
    return
  }
  func.func @transform_0(%arg0: i32) -> (i32, i32, i32) {
    %c0_i32 = arith.constant 0 : i32
    %c0_i32_0 = arith.constant 0 : i32
    %c0_i32_1 = arith.constant 0 : i32
    return %arg0, %c0_i32, %c0_i32_0 : i32, i32, i32
  }
  func.func @transform_1(%arg0: i32) -> (i32, i32, i32) {
    %c0_i32 = arith.constant 0 : i32
    %c0_i32_0 = arith.constant 0 : i32
    %c0_i32_1 = arith.constant 0 : i32
    return %arg0, %c0_i32, %c0_i32_0 : i32, i32, i32
  }
  func.func @transform_2(%arg0: i32) -> (i32, i32, i32) {
    %c0_i32 = arith.constant 0 : i32
    %c0_i32_0 = arith.constant 0 : i32
    %c0_i32_1 = arith.constant 0 : i32
    return %arg0, %c0_i32, %c0_i32_0 : i32, i32, i32
  }
  func.func @transform_3(%arg0: i32) -> (i32, i32, i32) {
    %c0_i32 = arith.constant 0 : i32
    %c0_i32_0 = arith.constant 0 : i32
    %c0_i32_1 = arith.constant 0 : i32
    return %arg0, %c0_i32, %c0_i32_0 : i32, i32, i32
  }
}

</mosaic_0001>

<bundles_post_ra>
// kernel: tpu_custom_call.1
= control target key start
LH: loop header
LB: loop body
LE: loop exit
PB: predicated region body
PF: predicated region fallthrough
CT: control target
= control target key end

     0   :  { %8 = vsyncpa [#allocation3], 0  ;;  %s1120_s0 = inlined_call_operand.hbm [shape: f32[8,2,32], index: 0, kind: input, shape index: {}]   ;;  %s1121_s1 = inlined_call_operand.hbm [shape: f32[8,32,32], index: 1, kind: input, shape index: {}]   ;;  %s1122_s2 = inlined_call_operand.hbm [shape: f32[8,1,32], index: 2, kind: input, shape index: {}]   ;;  %s1123_s3 = inlined_call_operand.hbm [shape: f32[8,2,32], index: 3, kind: output, shape index: {}]  }
   0x1   :  { %9 = vsyncpa [#allocation6], 0 }
   0x2   :  { %10 = vsyncpa [#allocation4], 0  ;;  %s1006_s12 = smov [#allocation5]  }
   0x3   :  { %s28_s13 = sshll.u32 %s1006_s12, 4  ;;  %s29_s13 = int_to_ptr.vmem [resolvable:$true] %s28_s13 }
   0x4   :  { %s928_s14 = scalar_lea.vmem %s29_s13, 4096  ;;  %p933_p1 = scmp.lt.s32.totalorder %s29_s13, %s29_s13 }
   0x5   :  { %p929_p0 = scmp.ne.s32.totalorder %s29_s13, %s928_s14  ;;  %p934_p2 = scmp.lt.s32.totalorder %s928_s14, %s928_s14 }
   0x7   :  { %p935_p3 = por %p934_p2, %p933_p1 }
   0x9   :  { %p936_p4 = pnand %p935_p3, %p929_p0 }
   0xb   :  { %939 = shalt.err (!%p936_p4)
}
   0xc   :  { %s1007_s15 = smov 128   ;;  %s1008_s16 = smov 8  }
   0xd   :  { %34 = dma.hbm_to_vmem [thread:$0]  %s1121_s1, 4096, %s29_s13, [#allocation6], %s1007_s15, %s1007_s15, %s1008_s16  }
   0xe   :  { %s1009_s19 = smov [#allocation2]  }
   0xf   :  { %s16_s20 = sshll.u32 %s1009_s19, 4  ;;  %s17_s20 = int_to_ptr.vmem [resolvable:$true] %s16_s20 }
  0x10   :  { %s948_s21 = scalar_lea.vmem %s17_s20, 256  ;;  %p953_p6 = scmp.lt.s32.totalorder %s17_s20, %s17_s20 }
  0x11   :  { %p949_p5 = scmp.ne.s32.totalorder %s17_s20, %s948_s21  ;;  %p954_p7 = scmp.lt.s32.totalorder %s948_s21, %s948_s21 }
  0x13   :  { %p955_p8 = por %p954_p7, %p953_p6 }
  0x15   :  { %p956_p9 = pnand %p955_p8, %p949_p5 }
  0x17   :  { %959 = shalt.err (!%p956_p9)
}
  0x18   :  { %s1010_s22 = smov 32   ;;  %s1011_s23 = smov 2  }
  0x19   :  { %22 = dma.hbm_to_vmem [thread:$0]  %s1120_s0, 256, %s17_s20, [#allocation3], %s1010_s22, %s1010_s22, %s1011_s23  }
  0x1a   :  { %s1012_s1 = smov [#allocation7]  }
  0x1b   :  { %s40_s26 = sshll.u32 %s1012_s1, 4  ;;  %s41_s26 = int_to_ptr.vmem [resolvable:$true] %s40_s26 }
  0x1c   :  { %s968_s27 = scalar_lea.vmem %s41_s26, 128  ;;  %p973_p11 = scmp.lt.s32.totalorder %s41_s26, %s41_s26 }
  0x1d   :  { %p969_p10 = scmp.ne.s32.totalorder %s41_s26, %s968_s27  ;;  %p974_p12 = scmp.lt.s32.totalorder %s968_s27, %s968_s27 }
  0x1f   :  { %p975_p13 = por %p974_p12, %p973_p11 }
  0x21   :  { %p976_p0 = pnand %p975_p13, %p969_p10 }
  0x23   :  { %979 = shalt.err (!%p976_p0)
}
  0x24   :  { %s1013_s28 = smov 16   ;;  %s1014_s29 = smov 1  }
  0x25   :  { %46 = dma.hbm_to_vmem [thread:$0]  %s1122_s2, 128, %s41_s26, [#allocation6], %s1013_s28, %s1013_s28, %s1014_s29  }
  0x26   :  { %1000 = dma.done.wait [#allocation3], 256  }
  0x27   :  { %1001 = vsyncadd [#allocation3], 4294967040 }
  0x28   :  { %1002 = dma.done.wait [#allocation6], 4224  }
  0x29   :  { %1003 = vsyncadd [#allocation6], 4294963072  ;;  %v1015_v0 = vmov 0.0   ;;  %vm1016_vm0 = vmmov 0   ;;  %v67_v1 = vld [vmem:[#allocation5 + $0x18] sm:$0xff]  ;;  %v66_v3 = vld [vmem:[#allocation5 + $0x10] sm:$0xff] }
  0x2a   :  { %820 = vmatprep.subr.mxu0 %v1015_v0  ;;  %831 = vmatprep.subr.mxu1 %v1015_v0  ;;  %v71_v2 = vld [vmem:[#allocation5 + $0x38] sm:$0xff]  ;;  %v70_v4 = vld [vmem:[#allocation5 + $0x30] sm:$0xff]  ;;  %v65_v5 = vld [vmem:[#allocation5 + $0x8] sm:$0xff]  ;;  %vm152_vm1 = vcmask 261120   ;;  %vm737_vm2 = vcmask 254976   ;;  %s1017_s0 = smov [#allocation8]  }
  0x2b   :  { %828 = vmatprep.mubr.msk.f32.mxu0 %vm1016_vm0, %v1015_v0  ;;  %839 = vmatprep.mubr.msk.f32.mxu1 %vm1016_vm0, %v1015_v0  ;;  %v69_v6 = vld [vmem:[#allocation5 + $0x28] sm:$0xff]  ;;  %v64_v7 = vld [vmem:[#allocation5] sm:$0xff]  ;;  %v56_v9 = vld [vmem:[#allocation2] sm:$0x3]  ;;  %s751_s2 = sshll.u32 %s1017_s0, 4  ;;  %s752_s2 = int_to_ptr.vmem [resolvable:$true] %s751_s2 }
  0x2c   :  { %821 = vmatpush3.msra.mxu0 %v67_v1  ;;  %832 = vmatpush3.msra.mxu1 %v71_v2  ;;  %v68_v8 = vld [vmem:[#allocation5 + $0x20] sm:$0xff]  ;;  %v57_v10 = vld [vmem:[#allocation2 + $0x2] sm:$0x3]  ;;  %v75_v11 = vld [vmem:[#allocation5 + $0x58] sm:$0xff]  ;;  %s980_s5 = scalar_lea.vmem %s752_s2, 256  ;;  %p985_p2 = scmp.lt.s32.totalorder %s752_s2, %s752_s2 }
  0x2d   :  { %822 = vmatprep.subr.mxu0 %v1015_v0  ;;  %833 = vmatprep.subr.mxu1 %v1015_v0  ;;  %v79_v12 = vld [vmem:[#allocation5 + $0x78] sm:$0xff]  ;;  %v74_v13 = vld [vmem:[#allocation5 + $0x50] sm:$0xff]  ;;  %v73_v15 = vld [vmem:[#allocation5 + $0x48] sm:$0xff]  ;;  %p981_p1 = scmp.ne.s32.totalorder %s752_s2, %s980_s5  ;;  %p986_p3 = scmp.lt.s32.totalorder %s980_s5, %s980_s5 }
  0x2e   :  { %823 = vmatpush3.msra.mxu0 %v66_v3  ;;  %834 = vmatpush3.msra.mxu1 %v70_v4  ;;  %v78_v14 = vld [vmem:[#allocation5 + $0x70] sm:$0xff]  ;;  %v77_v16 = vld [vmem:[#allocation5 + $0x68] sm:$0xff]  ;;  %v72_v17 = vld [vmem:[#allocation5 + $0x40] sm:$0xff] }
  0x2f   :  { %824 = vmatprep.subr.mxu0 %v1015_v0  ;;  %835 = vmatprep.subr.mxu1 %v1015_v0  ;;  %v76_v18 = vld [vmem:[#allocation5 + $0x60] sm:$0xff]  ;;  %v58_v19 = vld [vmem:[#allocation2 + $0x4] sm:$0x3]  ;;  %v59_v20 = vld [vmem:[#allocation2 + $0x6] sm:$0x3]  ;;  %p987_p4 = por %p986_p3, %p985_p2 }
  0x30   :  { %825 = vmatpush3.msra.mxu0 %v65_v5  ;;  %836 = vmatpush3.msra.mxu1 %v69_v6  ;;  %v83_v21 = vld [vmem:[#allocation5 + $0x98] sm:$0xff]  ;;  %v82_v23 = vld [vmem:[#allocation5 + $0x90] sm:$0xff]  ;;  %v81_v25 = vld [vmem:[#allocation5 + $0x88] sm:$0xff] }
  0x31   :  { %826 = vmatprep.subr.mxu0 %v1015_v0  ;;  %837 = vmatprep.subr.mxu1 %v1015_v0  ;;  %v87_v22 = vld [vmem:[#allocation5 + $0xb8] sm:$0xff]  ;;  %v86_v24 = vld [vmem:[#allocation5 + $0xb0] sm:$0xff]  ;;  %v85_v26 = vld [vmem:[#allocation5 + $0xa8] sm:$0xff]  ;;  %p988_p5 = pnand %p987_p4, %p981_p1 }
  0x32   :  { %827 = vmatpush3.msra.mxu0 %v64_v7  ;;  %838 = vmatpush3.msra.mxu1 %v68_v8  ;;  %v80_v27 = vld [vmem:[#allocation5 + $0x80] sm:$0xff]  ;;  %v60_v29 = vld [vmem:[#allocation2 + $0x8] sm:$0x3]  ;;  %v61_v30 = vld [vmem:[#allocation2 + $0xa] sm:$0x3] }
  0x33   :  { %829 = vmatmul.mubr.msk.f32.vlgmr.msra.gmra.mxu0 %vm152_vm1, %v56_v9  ;;  %840 = vmatmul.mubr.msk.f32.vlgmr.msra.gmra.mxu1 %vm152_vm1, %v57_v10  ;;  %v84_v28 = vld [vmem:[#allocation5 + $0xa0] sm:$0xff]  ;;  %v91_v31 = vld [vmem:[#allocation5 + $0xd8] sm:$0xff]  ;;  %v90_v33 = vld [vmem:[#allocation5 + $0xd0] sm:$0xff] }
  0x34   :  { %842 = vmatprep.subr.mxu0 %v1015_v0  ;;  %853 = vmatprep.subr.mxu1 %v1015_v0  ;;  %v95_v32 = vld [vmem:[#allocation5 + $0xf8] sm:$0xff]  ;;  %v94_v34 = vld [vmem:[#allocation5 + $0xf0] sm:$0xff]  ;;  %v89_v35 = vld [vmem:[#allocation5 + $0xc8] sm:$0xff] }
  0x35   :  { %843 = vmatpush3.msra.mxu0 %v75_v11  ;;  %854 = vmatpush3.msra.mxu1 %v79_v12  ;;  %v93_v36 = vld [vmem:[#allocation5 + $0xe8] sm:$0xff]  ;;  %v88_v37 = vld [vmem:[#allocation5 + $0xc0] sm:$0xff]  ;;  %v62_v39 = vld [vmem:[#allocation2 + $0xc] sm:$0x3] }
  0x36   :  { %844 = vmatprep.subr.mxu0 %v1015_v0  ;;  %855 = vmatprep.subr.mxu1 %v1015_v0  ;;  %v92_v38 = vld [vmem:[#allocation5 + $0xe0] sm:$0xff]  ;;  %v63_v40 = vld [vmem:[#allocation2 + $0xe] sm:$0x3] }
  0x37   :  { %845 = vmatpush3.msra.mxu0 %v74_v13  ;;  %856 = vmatpush3.msra.mxu1 %v78_v14  ;;  %v764_v41 = vld [vmem:[#allocation7] ss:$0 sm:$0xff]  ;;  %v765_v42 = vld [vmem:[#allocation7 + $0x1] ss:$0 sm:$0xff]  ;;  %v766_v49 = vld [vmem:[#allocation7 + $0x2] ss:$0 sm:$0xff] }
  0x38   :  { %846 = vmatprep.subr.mxu0 %v1015_v0  ;;  %857 = vmatprep.subr.mxu1 %v1015_v0  ;;  %v767_v50 = vld [vmem:[#allocation7 + $0x3] ss:$0 sm:$0xff]  ;;  %v768_v57 = vld [vmem:[#allocation7 + $0x4] ss:$0 sm:$0xff]  ;;  %v769_v58 = vld [vmem:[#allocation7 + $0x5] ss:$0 sm:$0xff] }
  0x39   :  { %847 = vmatpush3.msra.mxu0 %v73_v15  ;;  %858 = vmatpush3.msra.mxu1 %v77_v16  ;;  %v770_v1 = vld [vmem:[#allocation7 + $0x6] ss:$0 sm:$0xff]  ;;  %v771_v2 = vld [vmem:[#allocation7 + $0x7] ss:$0 sm:$0xff] }
  0x3a   :  { %848 = vmatprep.subr.mxu0 %v1015_v0  ;;  %859 = vmatprep.subr.mxu1 %v1015_v0 }
  0x3b   :  { %849 = vmatpush3.msra.mxu0 %v72_v17  ;;  %850 = vmatprep.mubr.msk.f32.mxu0 %vm1016_vm0, %v1015_v0 }
  0x3c   :  { %860 = vmatpush3.msra.mxu1 %v76_v18  ;;  %861 = vmatprep.mubr.msk.f32.mxu1 %vm1016_vm0, %v1015_v0 }
  0x3d   :  { %851 = vmatmul.mubr.msk.f32.vlgmr.msra.gmra.mxu0 %vm152_vm1, %v58_v19  ;;  %862 = vmatmul.mubr.msk.f32.vlgmr.msra.gmra.mxu1 %vm152_vm1, %v59_v20 }
  0x3e   :  { %864 = vmatprep.subr.mxu0 %v1015_v0  ;;  %875 = vmatprep.subr.mxu1 %v1015_v0 }
  0x3f   :  { %865 = vmatpush3.msra.mxu0 %v83_v21  ;;  %876 = vmatpush3.msra.mxu1 %v87_v22 }
  0x40   :  { %866 = vmatprep.subr.mxu0 %v1015_v0  ;;  %877 = vmatprep.subr.mxu1 %v1015_v0 }
  0x41   :  { %867 = vmatpush3.msra.mxu0 %v82_v23  ;;  %878 = vmatpush3.msra.mxu1 %v86_v24 }
  0x42   :  { %868 = vmatprep.subr.mxu0 %v1015_v0  ;;  %879 = vmatprep.subr.mxu1 %v1015_v0 }
  0x43   :  { %869 = vmatpush3.msra.mxu0 %v81_v25  ;;  %880 = vmatpush3.msra.mxu1 %v85_v26 }
  0x44   :  { %870 = vmatprep.subr.mxu0 %v1015_v0  ;;  %881 = vmatprep.subr.mxu1 %v1015_v0 }
  0x45   :  { %871 = vmatpush3.msra.mxu0 %v80_v27  ;;  %872 = vmatprep.mubr.msk.f32.mxu0 %vm1016_vm0, %v1015_v0 }
  0x46   :  { %882 = vmatpush3.msra.mxu1 %v84_v28  ;;  %883 = vmatprep.mubr.msk.f32.mxu1 %vm1016_vm0, %v1015_v0 }
  0x47   :  { %873 = vmatmul.mubr.msk.f32.vlgmr.msra.gmra.mxu0 %vm152_vm1, %v60_v29  ;;  %884 = vmatmul.mubr.msk.f32.vlgmr.msra.gmra.mxu1 %vm152_vm1, %v61_v30 }
  0x48   :  { %886 = vmatprep.subr.mxu0 %v1015_v0  ;;  %897 = vmatprep.subr.mxu1 %v1015_v0 }
  0x49   :  { %887 = vmatpush3.msra.mxu0 %v91_v31  ;;  %898 = vmatpush3.msra.mxu1 %v95_v32 }
  0x4a   :  { %888 = vmatprep.subr.mxu0 %v1015_v0  ;;  %899 = vmatprep.subr.mxu1 %v1015_v0 }
  0x4b   :  { %889 = vmatpush3.msra.mxu0 %v90_v33  ;;  %900 = vmatpush3.msra.mxu1 %v94_v34 }
  0x4c   :  { %890 = vmatprep.subr.mxu0 %v1015_v0  ;;  %901 = vmatprep.subr.mxu1 %v1015_v0 }
  0x4d   :  { %891 = vmatpush3.msra.mxu0 %v89_v35  ;;  %902 = vmatpush3.msra.mxu1 %v93_v36 }
  0x4e   :  { %892 = vmatprep.subr.mxu0 %v1015_v0  ;;  %903 = vmatprep.subr.mxu1 %v1015_v0 }
  0x4f   :  { %893 = vmatpush3.msra.mxu0 %v88_v37  ;;  %894 = vmatprep.mubr.msk.f32.mxu0 %vm1016_vm0, %v1015_v0 }
  0x50   :  { %904 = vmatpush3.msra.mxu1 %v92_v38  ;;  %905 = vmatprep.mubr.msk.f32.mxu1 %vm1016_vm0, %v1015_v0 }
  0x51   :  { %895 = vmatmul.mubr.msk.f32.vlgmr.msra.gmra.mxu0 %vm152_vm1, %v62_v39  ;;  %906 = vmatmul.mubr.msk.f32.vlgmr.msra.gmra.mxu1 %vm152_vm1, %v63_v40 }
  0xf3   :  { %v222_v43 = vpop.f32.mrf.mxu0  ;;  %v295_v44 = vpop.f32.mrf.mxu1 }
  0xf4   :  { %v223_v45 = vadd.f32 %v764_v41, %v222_v43  ;;  %v296_v46 = vadd.f32 %v765_v42, %v295_v44 }
  0xf5   :  { %v830_v47 = vpop.f32.mrf.mxu0  ;;  %v841_v48 = vpop.f32.mrf.mxu1 }
  0xf6   :  { %738 = vst.msk [vmem:[#allocation8] sm:$0x3] %vm737_vm2, %v223_v45  ;;  %739 = vst.msk [vmem:[#allocation8 + $0x2] sm:$0x3] %vm737_vm2, %v296_v46 }
  0xfd   :  { %v368_v51 = vpop.f32.mrf.mxu0  ;;  %v441_v52 = vpop.f32.mrf.mxu1 }
  0xfe   :  { %v369_v53 = vadd.f32 %v766_v49, %v368_v51  ;;  %v442_v54 = vadd.f32 %v767_v50, %v441_v52 }
  0xff   :  { %v852_v55 = vpop.f32.mrf.mxu0  ;;  %v863_v56 = vpop.f32.mrf.mxu1 }
 0x100   :  { %740 = vst.msk [vmem:[#allocation8 + $0x4] sm:$0x3] %vm737_vm2, %v369_v53  ;;  %741 = vst.msk [vmem:[#allocation8 + $0x6] sm:$0x3] %vm737_vm2, %v442_v54 }
 0x107   :  { %v514_v59 = vpop.f32.mrf.mxu0  ;;  %v587_v60 = vpop.f32.mrf.mxu1 }
 0x108   :  { %v515_v61 = vadd.f32 %v768_v57, %v514_v59  ;;  %v588_v62 = vadd.f32 %v769_v58, %v587_v60 }
 0x109   :  { %v874_v63 = vpop.f32.mrf.mxu0  ;;  %v885_v0 = vpop.f32.mrf.mxu1 }
 0x10a   :  { %742 = vst.msk [vmem:[#allocation8 + $0x8] sm:$0x3] %vm737_vm2, %v515_v61  ;;  %743 = vst.msk [vmem:[#allocation8 + $0xa] sm:$0x3] %vm737_vm2, %v588_v62 }
 0x111   :  { %v660_v3 = vpop.f32.mrf.mxu0  ;;  %v733_v4 = vpop.f32.mrf.mxu1 }
 0x112   :  { %v661_v5 = vadd.f32 %v770_v1, %v660_v3  ;;  %v734_v6 = vadd.f32 %v771_v2, %v733_v4 }
 0x113   :  { %v896_v7 = vpop.f32.mrf.mxu0  ;;  %v907_v8 = vpop.f32.mrf.mxu1 }
 0x114   :  { %744 = vst.msk [vmem:[#allocation8 + $0xc] sm:$0x3] %vm737_vm2, %v661_v5  ;;  %745 = vst.msk [vmem:[#allocation8 + $0xe] sm:$0x3] %vm737_vm2, %v734_v6 }
 0x115   :  { %991 = shalt.err (!%p988_p5)
}
 0x116   :  { %757 = dma.vmem_to_hbm [thread:$0]  %s752_s2, 256, %s1123_s3, [#allocation4], %s1010_s22, %s1010_s22, %s1011_s23  }
 0x117   :  { %1004 = dma.done.wait [#allocation4], 256  }
 0x118   :  { %1005 = vsyncadd [#allocation4], 4294967040 }
 0x119   :  { %761 = vsyncpa [#allocation3], 1 }
 0x11a   :  { %762 = vsyncpa [#allocation6], 1 }
 0x11b   :  { %763 = vsyncpa [#allocation4], 1 }

</bundles_post_ra>
